<compile_context>
chip_gen: v7x
topology: tpu7x:2x2x1
jax: 0.10.0
libtpu: 0.0.40
codegen_flags: <defaults>
</compile_context>

<pallas_src>
import jax
import jax.numpy as jnp
from jax.experimental import pallas as pl
from jax.experimental.pallas import tpu as pltpu

LANES = 128
SUBLANES = 8


def _cdiv(a, b):
    return (a + b - 1) // b


def _round_up(a, b):
    return _cdiv(a, b) * b


def _sc_partial_kernel(x_ref, y_ref, num_ref, den_ref, num_acc, den_acc):
    """Accumulate sum((y-x)^2) and sum(y^2) across the reduction grid axis."""
    k = pl.program_id(2)

    @pl.when(k == 0)
    def _init():
        num_acc[...] = jnp.zeros_like(num_acc)
        den_acc[...] = jnp.zeros_like(den_acc)

    x = x_ref[...].astype(jnp.float32)          # (1, r_tile, 128)
    y = y_ref[...].astype(jnp.float32)
    d = y - x
    # Lane-shaped partial accumulation (VPU only, hidden under the DMA); the
    # expensive cross-lane collapse is done once per (batch, split) below.
    num_acc[...] += jnp.sum((d * d).reshape(-1, SUBLANES, LANES), axis=0)
    den_acc[...] += jnp.sum((y * y).reshape(-1, SUBLANES, LANES), axis=0)

    @pl.when(k == pl.num_programs(2) - 1)
    def _finalize():
        num_ref[...] = jnp.sum(num_acc[...]).reshape(1, 1, 1).astype(num_ref.dtype)
        den_ref[...] = jnp.sum(den_acc[...]).reshape(1, 1, 1).astype(den_ref.dtype)


def spectral_convergence_loss(x_mag: jax.Array, y_mag: jax.Array,
                              *, row_tile: int = 4096) -> jax.Array:
    """Pallas implementation of SpectralConvergenceLoss.forward.

    Args:
      x_mag: [B, F, T] predicted magnitude spectrogram (f32 or bf16).
      y_mag: [B, F, T] target magnitude spectrogram.
      row_tile: rows (of 128 lanes) per reduction step; 4096 -> 2 MiB f32 tile.
    Returns:
      [B, 1, 1] per-batch spectral convergence loss (keepdim semantics).
    """
    assert x_mag.shape == y_mag.shape and x_mag.ndim == 3, "expected [B, F, T]"
    B, F, T = x_mag.shape
    N = F * T
    out_dtype = jnp.promote_types(x_mag.dtype, y_mag.dtype)

    # Flatten the (F, T) plane into 128-lane rows.
    rows = _cdiv(N, LANES)

    # Extra parallel split of the reduction so both v7x TensorCores get work
    # even for a single-spectrogram batch.
    P = 2 if B == 1 else 1

    rows_per_split = _round_up(_cdiv(rows, P), SUBLANES)
    r_tile = min(_round_up(row_tile, SUBLANES), rows_per_split)   # multiple of 8
    K = _cdiv(rows_per_split, r_tile)                             # reduction steps
    rows_pad = P * K * r_tile
    n_pad = rows_pad * LANES

    def _prep(a):
        a = a.reshape(B, N)
        if n_pad != N:
            # Zero padding: contributes nothing to the sums of squares.
            a = jnp.pad(a, ((0, 0), (0, n_pad - N)))
        return a.reshape(B, rows_pad, LANES)

    xr = _prep(x_mag)
    yr = _prep(y_mag)

    in_spec = pl.BlockSpec((1, r_tile, LANES), lambda b, p, k: (b, p * K + k, 0))
    out_spec = pl.BlockSpec((1, 1, 1), lambda b, p, k: (b * P + p, 0, 0))

    num_parts, den_parts = pl.pallas_call(
        _sc_partial_kernel,
        out_shape=(
            jax.ShapeDtypeStruct((B * P, 1, 1), jnp.float32),
            jax.ShapeDtypeStruct((B * P, 1, 1), jnp.float32),
        ),
        grid_spec=pltpu.PrefetchScalarGridSpec(
            num_scalar_prefetch=0,
            grid=(B, P, K),
            in_specs=[in_spec, in_spec],
            out_specs=[out_spec, out_spec],
            scratch_shapes=[
                pltpu.VMEM((SUBLANES, LANES), jnp.float32),
                pltpu.VMEM((SUBLANES, LANES), jnp.float32),
            ],
        ),
        compiler_params=pltpu.CompilerParams(
            dimension_semantics=("parallel", "parallel", "arbitrary"),
            vmem_limit_bytes=32 * 1024 * 1024,
        ),
    )(xr, yr)

    num_sq = jnp.sum(num_parts.reshape(B, P), axis=1)
    den_sq = jnp.sum(den_parts.reshape(B, P), axis=1)
    # sqrt(num)/sqrt(den) == sqrt(num/den) for non-negative sums of squares.
    # NOTE: like the PyTorch reference, an all-zero target frame yields inf/nan
    # (no eps added, to keep identical semantics).
    loss = jnp.sqrt(num_sq / den_sq)
    return loss.reshape(B, 1, 1).astype(out_dtype)


def _reference(x_mag, y_mag):
    num = jnp.sqrt(jnp.sum((y_mag - x_mag) ** 2, axis=(-1, -2), keepdims=True))
    den = jnp.sqrt(jnp.sum(y_mag ** 2, axis=(-1, -2), keepdims=True))
    return num / den


if __name__ == "__main__":
    key = jax.random.PRNGKey(0)

    def _check(B, F, T, k):
        kx, ky = jax.random.split(k)
        # Magnitudes are non-negative; use abs of normals.
        x_mag = jnp.abs(jax.random.normal(kx, (B, F, T), dtype=jnp.float32))
        y_mag = jnp.abs(jax.random.normal(ky, (B, F, T), dtype=jnp.float32))
        out = jax.block_until_ready(spectral_convergence_loss(x_mag, y_mag))
        ref = _reference(x_mag, y_mag)
        assert out.shape == (B, 1, 1)
        assert jnp.allclose(out, ref, rtol=1e-5, atol=1e-6), (B, F, T, out, ref)

    k0, k1, k2 = jax.random.split(key, 3)
    _check(2, 64, 32, k0)   # aligned shapes, multi-batch (P=1)
    _check(1, 64, 32, k1)   # single batch -> exercises the P=2 core-split path
    _check(2, 63, 17, k2)   # non-(8*128)-aligned -> exercises zero-pad path

    print("KERNEL_OK")
</pallas_src>

<mosaic_0001>
module attributes {stable_mosaic.version = 11 : i64} {
  func.func @_sc_partial_kernel(%arg0: i32, %arg1: i32, %arg2: i32, %arg3: memref<1x16x128xf32, #tpu.memory_space<vmem>>, %arg4: memref<1x16x128xf32, #tpu.memory_space<vmem>>, %arg5: memref<1x1x1xf32, #tpu.memory_space<vmem>>, %arg6: memref<1x1x1xf32, #tpu.memory_space<vmem>>, %arg7: memref<8x128xf32, #tpu.memory_space<vmem>>, %arg8: memref<8x128xf32, #tpu.memory_space<vmem>>) attributes {dimension_semantics = [#tpu.dimension_semantics<parallel>, #tpu.dimension_semantics<parallel>, #tpu.dimension_semantics<arbitrary>], iteration_bounds = array<i64: 2, 1, 1>, scalar_prefetch = 0 : i64, scratch_operands = 2 : i64, tpu.core_type = #tpu.core_type<tc>, window_params = [{transform_indices = @transform_0, window_bounds = array<i64: 1, 16, 128>}, {transform_indices = @transform_1, window_bounds = array<i64: 1, 16, 128>}, {transform_indices = @transform_2, window_bounds = array<i64: 1, 1, 1>}, {transform_indices = @transform_3, window_bounds = array<i64: 1, 1, 1>}]} {
    %c0_i32 = arith.constant 0 : i32
    %0 = arith.cmpi eq, %arg2, %c0_i32 : i32
    %1 = arith.extui %0 : i1 to i32
    %c0_i32_0 = arith.constant 0 : i32
    %2 = arith.cmpi ne, %1, %c0_i32_0 : i32
    scf.if %2 {
      %cst_17 = arith.constant 0.000000e+00 : f32
      %21 = vector.broadcast %cst_17 : f32 to vector<8x128xf32>
      %c0_18 = arith.constant 0 : index
      %c0_19 = arith.constant 0 : index
      %22 = vector.load %arg7[%c0_18, %c0_19] : memref<8x128xf32, #tpu.memory_space<vmem>>, vector<8x128xf32>
      tpu.vector_store %arg7[%c0_18, %c0_19], %21 {strides = array<i32>} : memref<8x128xf32, #tpu.memory_space<vmem>>, vector<8x128xf32>,
      %cst_20 = arith.constant 0.000000e+00 : f32
      %23 = vector.broadcast %cst_20 : f32 to vector<8x128xf32>
      %c0_21 = arith.constant 0 : index
      %c0_22 = arith.constant 0 : index
      %24 = vector.load %arg8[%c0_21, %c0_22] : memref<8x128xf32, #tpu.memory_space<vmem>>, vector<8x128xf32>
      tpu.vector_store %arg8[%c0_21, %c0_22], %23 {strides = array<i32>} : memref<8x128xf32, #tpu.memory_space<vmem>>, vector<8x128xf32>,
    } else {
    }
    %c0 = arith.constant 0 : index
    %c0_1 = arith.constant 0 : index
    %c0_2 = arith.constant 0 : index
    %3 = vector.load %arg3[%c0, %c0_1, %c0_2] : memref<1x16x128xf32, #tpu.memory_space<vmem>>, vector<1x16x128xf32>
    %c0_3 = arith.constant 0 : index
    %c0_4 = arith.constant 0 : index
    %c0_5 = arith.constant 0 : index
    %4 = vector.load %arg4[%c0_3, %c0_4, %c0_5] : memref<1x16x128xf32, #tpu.memory_space<vmem>>, vector<1x16x128xf32>
    %5 = arith.subf %4, %3 : vector<1x16x128xf32>
    %c0_6 = arith.constant 0 : index
    %c0_7 = arith.constant 0 : index
    %6 = vector.load %arg7[%c0_6, %c0_7] : memref<8x128xf32, #tpu.memory_space<vmem>>, vector<8x128xf32>
    %7 = arith.mulf %5, %5 : vector<1x16x128xf32>
    %8 = vector.shape_cast %7 : vector<1x16x128xf32> to vector<2x8x128xf32>
    %cst = arith.constant dense<0.000000e+00> : vector<8x128xf32>
    %9 = vector.multi_reduction <add>, %8, %cst [0] : vector<2x8x128xf32> to vector<8x128xf32>
    %10 = arith.addf %6, %9 : vector<8x128xf32>
    %c0_8 = arith.constant 0 : index
    %c0_9 = arith.constant 0 : index
    %11 = vector.load %arg7[%c0_8, %c0_9] : memref<8x128xf32, #tpu.memory_space<vmem>>, vector<8x128xf32>
    tpu.vector_store %arg7[%c0_8, %c0_9], %10 {strides = array<i32>} : memref<8x128xf32, #tpu.memory_space<vmem>>, vector<8x128xf32>,
    %c0_10 = arith.constant 0 : index
    %c0_11 = arith.constant 0 : index
    %12 = vector.load %arg8[%c0_10, %c0_11] : memref<8x128xf32, #tpu.memory_space<vmem>>, vector<8x128xf32>
    %13 = arith.mulf %4, %4 : vector<1x16x128xf32>
    %14 = vector.shape_cast %13 : vector<1x16x128xf32> to vector<2x8x128xf32>
    %cst_12 = arith.constant dense<0.000000e+00> : vector<8x128xf32>
    %15 = vector.multi_reduction <add>, %14, %cst_12 [0] : vector<2x8x128xf32> to vector<8x128xf32>
    %16 = arith.addf %12, %15 : vector<8x128xf32>
    %c0_13 = arith.constant 0 : index
    %c0_14 = arith.constant 0 : index
    %17 = vector.load %arg8[%c0_13, %c0_14] : memref<8x128xf32, #tpu.memory_space<vmem>>, vector<8x128xf32>
    tpu.vector_store %arg8[%c0_13, %c0_14], %16 {strides = array<i32>} : memref<8x128xf32, #tpu.memory_space<vmem>>, vector<8x128xf32>,
    %c0_i32_15 = arith.constant 0 : i32
    %18 = arith.cmpi eq, %arg2, %c0_i32_15 : i32
    %19 = arith.extui %18 : i1 to i32
    %c0_i32_16 = arith.constant 0 : i32
    %20 = arith.cmpi ne, %19, %c0_i32_16 : i32
    scf.if %20 {
      %c0_17 = arith.constant 0 : index
      %c0_18 = arith.constant 0 : index
      %21 = vector.load %arg7[%c0_17, %c0_18] : memref<8x128xf32, #tpu.memory_space<vmem>>, vector<8x128xf32>
      %22 = vector.shape_cast %21 : vector<8x128xf32> to vector<1x8x128xf32>
      %cst_19 = arith.constant dense<0.000000e+00> : vector<1xf32>
      %23 = vector.multi_reduction <add>, %22, %cst_19 [1, 2] : vector<1x8x128xf32> to vector<1xf32>
      %24 = vector.shape_cast %23 : vector<1xf32> to vector<1x1x1xf32>
      %25 = vector.extract %24[0, 0, 0] : f32 from vector<1x1x1xf32>
      %26 = vector.broadcast %25 : f32 to vector<1x1x1xf32>
      %c0_20 = arith.constant 0 : index
      %c0_21 = arith.constant 0 : index
      %c0_22 = arith.constant 0 : index
      %27 = vector.load %arg5[%c0_20, %c0_21, %c0_22] : memref<1x1x1xf32, #tpu.memory_space<vmem>>, vector<1x1x1xf32>
      tpu.vector_store %arg5[%c0_20, %c0_21, %c0_22], %26 {strides = array<i32>} : memref<1x1x1xf32, #tpu.memory_space<vmem>>, vector<1x1x1xf32>,
      %c0_23 = arith.constant 0 : index
      %c0_24 = arith.constant 0 : index
      %28 = vector.load %arg8[%c0_23, %c0_24] : memref<8x128xf32, #tpu.memory_space<vmem>>, vector<8x128xf32>
      %29 = vector.shape_cast %28 : vector<8x128xf32> to vector<1x8x128xf32>
      %cst_25 = arith.constant dense<0.000000e+00> : vector<1xf32>
      %30 = vector.multi_reduction <add>, %29, %cst_25 [1, 2] : vector<1x8x128xf32> to vector<1xf32>
      %31 = vector.shape_cast %30 : vector<1xf32> to vector<1x1x1xf32>
      %32 = vector.extract %31[0, 0, 0] : f32 from vector<1x1x1xf32>
      %33 = vector.broadcast %32 : f32 to vector<1x1x1xf32>
      %c0_26 = arith.constant 0 : index
      %c0_27 = arith.constant 0 : index
      %c0_28 = arith.constant 0 : index
      %34 = vector.load %arg6[%c0_26, %c0_27, %c0_28] : memref<1x1x1xf32, #tpu.memory_space<vmem>>, vector<1x1x1xf32>
      tpu.vector_store %arg6[%c0_26, %c0_27, %c0_28], %33 {strides = array<i32>} : memref<1x1x1xf32, #tpu.memory_space<vmem>>, vector<1x1x1xf32>,
    } else {
    }
    return
  }
  func.func @transform_0(%arg0: i32, %arg1: i32, %arg2: i32) -> (i32, i32, i32) {
    %c1_i32 = arith.constant 1 : i32
    %0 = arith.muli %arg1, %c1_i32 : i32
    %1 = arith.addi %0, %arg2 : i32
    %c0_i32 = arith.constant 0 : i32
    %c0_i32_0 = arith.constant 0 : i32
    return %arg0, %1, %c0_i32 : i32, i32, i32
  }
  func.func @transform_1(%arg0: i32, %arg1: i32, %arg2: i32) -> (i32, i32, i32) {
    %c1_i32 = arith.constant 1 : i32
    %0 = arith.muli %arg1, %c1_i32 : i32
    %1 = arith.addi %0, %arg2 : i32
    %c0_i32 = arith.constant 0 : i32
    %c0_i32_0 = arith.constant 0 : i32
    return %arg0, %1, %c0_i32 : i32, i32, i32
  }
  func.func @transform_2(%arg0: i32, %arg1: i32, %arg2: i32) -> (i32, i32, i32) {
    %c1_i32 = arith.constant 1 : i32
    %0 = arith.muli %arg0, %c1_i32 : i32
    %1 = arith.addi %0, %arg1 : i32
    %c0_i32 = arith.constant 0 : i32
    %c0_i32_0 = arith.constant 0 : i32
    %c0_i32_1 = arith.constant 0 : i32
    return %1, %c0_i32, %c0_i32_0 : i32, i32, i32
  }
  func.func @transform_3(%arg0: i32, %arg1: i32, %arg2: i32) -> (i32, i32, i32) {
    %c1_i32 = arith.constant 1 : i32
    %0 = arith.muli %arg0, %c1_i32 : i32
    %1 = arith.addi %0, %arg1 : i32
    %c0_i32 = arith.constant 0 : i32
    %c0_i32_0 = arith.constant 0 : i32
    %c0_i32_1 = arith.constant 0 : i32
    return %1, %c0_i32, %c0_i32_0 : i32, i32, i32
  }
}

</mosaic_0001>

<bundles_post_ra>
// kernel: tpu_custom_call.1
= control target key start
LH: loop header
LB: loop body
LE: loop exit
PB: predicated region body
PF: predicated region fallthrough
CT: control target
= control target key end

     0   :  { %9 = vsyncpa [#allocation5], 0  ;;  %s877_s0 = inlined_call_operand.hbm [shape: f32[2,16,128], index: 0, kind: input, shape index: {}]   ;;  %s878_s1 = inlined_call_operand.hbm [shape: f32[2,16,128], index: 1, kind: input, shape index: {}]   ;;  %s879_s2 = inlined_call_operand.vmem [shape: f32[2,1,1], index: 2, kind: output, shape index: {0}]   ;;  %s880_s3 = inlined_call_operand.vmem [shape: f32[2,1,1], index: 3, kind: output, shape index: {1}]  }
   0x1   :  { %11 = vsyncpa [#allocation5 + $0x1], 0 }
   0x2   :  { %12 = vsyncpa [#allocation7], 0 }
   0x3   :  { %14 = vsyncpa [#allocation7 + $0x1], 0  ;;  %s690_s12 = smov 0   ;;  %s692_s13 = smov 0  }
   0x4   :  { %s694_s14 = smov 0   ;;  %s696_s15 = smov 0  }
   0x5   :  { %s698_s16 = smov 0   ;;  %s700_s17 = smov 0  }
   0x6 LB: > { %s467_s18 = sadd.s32 4294967295, %s664_s17   ;;  %s39_s19 = sadd.s32 1, %s660_s16  ;;  %s664_s17 = sphi %s700_s17, %s20_s17   ;;  %s660_s16 = sphi %s698_s16, %s891_s16   ;;  %s656_s15 = sphi %s696_s15, %s890_s15   ;;  %s652_s14 = sphi %s694_s14, %s889_s14   ;;  %s648_s13 = sphi %s692_s13, %s888_s13   ;;  %s644_s12 = sphi %s690_s12, %s887_s12  }
   0x7   : > { %p41_p0 = scmp.ge.s32.totalorder %s39_s19, 2  ;;  %s50_s20 = sadd.s32 1, %s652_s14 }
   0x8   : > { %p57_p1 = scmp.ne.s32.totalorder %s652_s14, %s648_s13  ;;  %p58_p2 = scmp.eq.s32.totalorder %s664_s17, 0 }
   0x9   : > { %s893_s19 = smov (%p41_p0, %s39_s19), 0  ;;  %p63_p4 = scmp.ne.s32.totalorder %s648_s13, %s644_s12 }
   0xa   : > { %p726_p3 = por %p58_p2, %p57_p1  ;;  %s45_s22 = ssub.s32 %s660_s16, %s893_s19 }
   0xb   : > { %p64_p5 = scmp.eq.s32.totalorder %s467_s18, 0  ;;  %p48_p6 = scmp.eq.s32.totalorder %s45_s22, 0 }
   0xc   : > { %p499_p8 = scmp.lt.s32.totalorder %s664_s17, 2  ;;  %s742_s25 = sand.u32 1, %s652_s14  }
   0xd   : > { %p733_p7 = por %p64_p5, %p63_p4  ;;  %s482_s26 = sshll.u32 %s660_s16, 8 }
   0xe   : > { %s739_s24 = scalar_select %p48_p6, %s652_s14, %s50_s20  }
   0xf   : > { %s883_s23 = scalar_select %p733_p7, 1, 0 }
  0x10   : > { %s471_s27 = sshll.u32 %s742_s25, 4  ;;  %s751_s30 = scalar_lea.hbm %s877_s0, %s482_s26 }
  0x11   : > { %s177_s4 = scalar_lea.vmem [#allocation4], %s471_s27  ;;  %p757_p9 = pnand %p499_p8, %p726_p3 }
  0x12   : > { %s187_s5 = sshll.u32 %s177_s4, 4  ;;  %s174_s7 = scalar_lea.sflag [#allocation5], %s742_s25  ;;  %s761_s5 = int_to_ptr.vmem [resolvable:$true] %s187_s5 }
  0x13   : > { %s550_s8 = scalar_lea.hbm %s751_s30, 256  ;;  %p552_p11 = pneg %p757_p9 }
  0x14   : > { %p551_p10 = scmp.ne.s32.totalorder %s751_s30, %s550_s8  ;;  %s555_s11 = scalar_lea.hbm %s877_s0, 512 }
  0x15   : > { %p556_p0 = scmp.lt.u32.totalorder %s751_s30, %s877_s0  ;;  %p557_p1 = scmp.lt.u32.totalorder %s555_s11, %s550_s8 }
  0x16   : > { %p553_p12 = pnand %p552_p11, %p551_p10  ;;  %p559_p3 = scmp.lt.u32.totalorder %s550_s8, %s751_s30 }
  0x17   : > { %p558_p2 = por %p557_p1, %p556_p0 }
  0x18   : > { %p554_p13 = pneg %p553_p12 }
  0x19   : > { %p560_p4 = por %p559_p3, %p558_p2 }
  0x1b   : > { %p561_p5 = pnand %p560_p4, %p554_p13 }
  0x1d   : > { %564 = shalt.err (!%p561_p5)
}
  0x1e   : > { %s565_s20 = scalar_lea.vmem %s761_s5, 256  ;;  %s666_s21 = smov [#allocation4]  }
  0x1f   : > { %p566_p6 = scmp.ne.s32.totalorder %s761_s5, %s565_s20  ;;  %s570_s22 = sshll.u32 %s666_s21, 4  ;;  %s571_s22 = int_to_ptr.vmem [resolvable:$false] %s570_s22 }
  0x20   : > { %s572_s28 = scalar_lea.vmem %s571_s22, 512  ;;  %p573_p12 = scmp.lt.s32.totalorder %s761_s5, %s571_s22 }
  0x21   : > { %p568_p8 = pnand %p566_p6, %p552_p11  ;;  %p574_p0 = scmp.lt.s32.totalorder %s572_s28, %s565_s20 }
  0x23   : > { %p569_p10 = pneg %p568_p8  ;;  %p575_p1 = por %p574_p0, %p573_p12 }
  0x25   : > { %p576_p2 = pnand %p575_p1, %p569_p10 }
  0x27   : > { %579 = shalt.err (!%p576_p2)
}
  0x28   : > { %s667_s29 = smov 128   ;;  %s668_s4 = smov 8  }
  0x29   : > { %495 = dma.hbm_to_vmem [thread:$0]  (!%p757_p9), %s751_s30, 256, %s761_s5, %s174_s7, %s667_s29, %s667_s29, %s668_s4  }
  0x2a   : > { %p477_p13 = scmp.ge.s32.totalorder %s664_s17, 1  ;;  %p219_p3 = scmp.lt.s32.totalorder %s664_s17, 3 }
  0x2b   : > { %s805_s11 = scalar_lea.hbm %s878_s1, %s482_s26  ;;  %s201_s12 = scalar_lea.vmem [#allocation6], %s471_s27 }
  0x2c   : > { %p796_p4 = pnand %p477_p13, %p219_p3  ;;  %s211_s18 = sshll.u32 %s201_s12, 4  ;;  %s809_s18 = int_to_ptr.vmem [resolvable:$true] %s211_s18 }
  0x2d   : > { %s198_s30 = scalar_lea.sflag [#allocation7], %s742_s25  ;;  %s580_s5 = scalar_lea.hbm %s805_s11, 256 }
  0x2e   : > { %p581_p5 = scmp.ne.s32.totalorder %s805_s11, %s580_s5  ;;  %s585_s26 = scalar_lea.hbm %s878_s1, 512 }
  0x2f   : > { %p586_p10 = scmp.lt.u32.totalorder %s805_s11, %s878_s1  ;;  %p587_p12 = scmp.lt.u32.totalorder %s585_s26, %s580_s5 }
  0x30   : > { %p583_p6 = pnand %p581_p5, %p552_p11  ;;  %p589_p1 = scmp.lt.u32.totalorder %s580_s5, %s805_s11 }
  0x31   : > { %p588_p0 = por %p587_p12, %p586_p10 }
  0x32   : > { %p584_p8 = pneg %p583_p6 }
  0x33   : > { %p590_p2 = por %p589_p1, %p588_p0 }
  0x35   : > { %p591_p13 = pnand %p590_p2, %p584_p8 }
  0x37   : > { %594 = shalt.err (!%p591_p13)
}
  0x38   : > { %s595_s27 = scalar_lea.vmem %s809_s18, 256  ;;  %s669_s28 = smov [#allocation6]  }
  0x39   : > { %p596_p3 = scmp.ne.s32.totalorder %s809_s18, %s595_s27  ;;  %s600_s9 = sshll.u32 %s669_s28, 4  ;;  %s601_s9 = int_to_ptr.vmem [resolvable:$false] %s600_s9 }
  0x3a   : > { %s602_s10 = scalar_lea.vmem %s601_s9, 512  ;;  %p603_p7 = scmp.lt.s32.totalorder %s809_s18, %s601_s9 }
  0x3b   : > { %p598_p5 = pnand %p596_p3, %p552_p11  ;;  %p604_p10 = scmp.lt.s32.totalorder %s602_s10, %s595_s27 }
  0x3d   : > { %p599_p6 = pneg %p598_p5  ;;  %p605_p12 = por %p604_p10, %p603_p7 }
  0x3f   : > { %p606_p0 = pnand %p605_p12, %p599_p6 }
  0x41   : > { %609 = shalt.err (!%p606_p0)
}
  0x42   : > { %498 = dma.hbm_to_vmem [thread:$0]  (!%p757_p9), %s805_s11, 256, %s809_s18, %s198_s30, %s667_s29, %s667_s29, %s668_s4  }
  0x43   : > { %223 = sbr.rel (%p796_p4) target bundleno = 295 (0x127), region = 28  ;;  %s225_s12 = sand.u32 (!%p796_p4), 1, %s648_s13  }
  0x44   : > { %s478_s5 = sshll.u32 (!%p796_p4), %s225_s12, 4  ;;  %s226_s7 = scalar_lea.sflag (!%p796_p4), [#allocation5], %s225_s12 }
  0x45   : > { %s229_s20 = scalar_lea.vmem (!%p796_p4), [#allocation4], %s478_s5  ;;  %p886_p7 = scmp.ne.s32.totalorder (!%p796_p4), %s883_s23, 0 }
  0x4a   : > { %635 = dma.done.wait (%p886_p7), %s226_s7, 256  }
  0x4b   : > { %637 = vsyncadd (%p886_p7), %s226_s7, 4294967040  ;;  %s235_s6 = scalar_lea.sflag [#allocation7], %s225_s12  ;;  %s238_s25 = scalar_lea.vmem [#allocation6], %s478_s5 }
  0x4c   : > { %639 = dma.done.wait (%p886_p7), %s235_s6, 256  }
  0x4d   : > { %641 = vsyncadd (%p886_p7), %s235_s6, 4294967040  ;;  %v289_v0 = vld [vmem:[%s229_s20] sm:$0xff]  ;;  %v290_v1 = vld [vmem:[%s229_s20 + $0x8] sm:$0xff]  ;;  %p274_p9 = scmp.lt.s32.totalorder %s656_s15, 1  ;;  %vm321_vm0 = vcmask 0  }
  0x4e   : > { %v291_v2 = vld [vmem:[%s238_s25] sm:$0xff]  ;;  %v292_v3 = vld [vmem:[%s238_s25 + $0x8] sm:$0xff] }
  0x4f   : > { %v293_v4 = vsub.f32 %v291_v2, %v289_v0  ;;  %v294_v5 = vsub.f32 %v292_v3, %v290_v1  ;;  %v302_v8 = vmul.f32 %v291_v2, %v291_v2  ;;  %v303_v9 = vmul.f32 %v292_v3, %v292_v3  ;;  %s895_s15 = smov (!%p274_p9, %s656_s15), 1 }
  0x50   : > { %s276_s4 = scalar_lea.vmem %s879_s2, %s895_s15  ;;  %s281_s30 = scalar_lea.vmem %s880_s3, %s895_s15 }
  0x51   : > { %v296_v6 = vmul.f32 %v293_v4, %v293_v4  ;;  %v297_v7 = vmul.f32 %v294_v5, %v294_v5  ;;  %v304_v11 = vadd.f32 %v303_v9, %v302_v8 }
  0x53   : > { %v298_v10 = vadd.f32 %v297_v7, %v296_v6 }
  0x55   : > { %311 = vadd.xlane.f32.xlu0 %v298_v10 }
  0x59   : > { %324 = vadd.xlane.f32.xlu0 %v304_v11 }
  0xe2   : > { %v312_v12 = vpop.xlane.xlu0 %311 }
  0xe3   : > { %v313_v13 = vrot.slane %v312_v12, 4 }
  0xe5   : > { %v314_v14 = vadd.f32 %v313_v13, %v312_v12 }
  0xe6   : > { %v325_v15 = vpop.xlane.xlu0 %324 }
  0xe7   : > { %v315_v16 = vrot.slane %v314_v14, 2  ;;  %v326_v17 = vrot.slane %v325_v15, 4 }
  0xe9   : > { %v327_v18 = vadd.f32 %v326_v17, %v325_v15  ;;  %v316_v19 = vadd.f32 %v315_v16, %v314_v14 }
  0xeb   : > { %v328_v20 = vrot.slane %v327_v18, 2  ;;  %v317_v21 = vrot.slane %v316_v19, 1 }
  0xed   : > { %v329_v22 = vadd.f32 %v328_v20, %v327_v18  ;;  %v318_v23 = vadd.f32 %v317_v21, %v316_v19 }
  0xef   : > { %484 = vpush %v318_v23  ;;  %v330_v24 = vrot.slane %v329_v22, 1 }
  0xf1   : > { %v331_v25 = vadd.f32 %v330_v24, %v329_v22 }
  0xf3   : > { %486 = vpush %v331_v25 }
 0x120   : > { %s485_s8 = spop %484 }
 0x121   : > { %v320_v26 = vstv %s485_s8 }
 0x122   : > { %322 = vst.msk [vmem:[%s276_s4] sm:$0x1] %vm321_vm0, %v320_v26 }
 0x124   : > { %s487_s26 = spop %486 }
 0x125   : > { %v333_v27 = vstv %s487_s26 }
 0x126   : > { %334 = vst.msk [vmem:[%s281_s30] sm:$0x1] %vm321_vm0, %v333_v27 }
 0x127 PF: > { %s20_s17 = sadd.s32 1, %s664_s17   ;;  %s887_s12 = smov %s648_s13 }
 0x128   : > { %p17_p11 = scmp.ge.s32.totalorder %s20_s17, 4   ;;  %s888_s13 = smov %s652_s14 }
 0x129   : > { %s889_s14 = smov %s739_s24  ;;  %s890_s15 = smov %s660_s16 }
 0x12a   : > { %s891_s16 = smov %s893_s19  ;;  %19 = sbr.rel (!%p17_p11) target bundleno = 6 (0x6), region = 101 }
 0x131   :  { %370 = vsyncpa [#allocation5], 1 }
 0x132   :  { %372 = vsyncpa [#allocation5 + $0x1], 1 }
 0x133   :  { %373 = vsyncpa [#allocation7], 1 }
 0x134   :  { %375 = vsyncpa [#allocation7 + $0x1], 1 }

</bundles_post_ra>
